<compile_context>
chip_gen: v5e
topology: v5e:2x2
jax: 0.10.0
libtpu: 0.0.40
codegen_flags: <defaults>
</compile_context>

<pallas_src>
import functools

import numpy as np
import jax
import jax.numpy as jnp
from jax.experimental import pallas as pl
from jax.experimental.pallas import tpu as pltpu

# Deterministic stand-ins for the module-level weight globals.
D0_WEIGHT = 1.0
PT_WEIGHT = 2.0
DZ_WEIGHT = 1.5
TANL_WEIGHT = 0.5
COS_WEIGHT = 1.0
SIN_WEIGHT = 1.0

EPSILON = 1e-6
LAMBDA_REG = 1e-3

_N_PARAMS = 6
_LANES = 384                                 # lcm(6, 128): lane-dense width
_ROWS_PER_LANE_ROW = _LANES // _N_PARAMS     # 64 original rows per lane-dense row

_WEIGHTS = np.array([D0_WEIGHT, PT_WEIGHT, DZ_WEIGHT, TANL_WEIGHT,
                     COS_WEIGHT, SIN_WEIGHT], dtype=np.float32)


def _round_up(x, m):
    return ((x + m - 1) // m) * m


def _wmse_kernel(w_ref, pred_ref, tgt_ref, var_ref, out_ref, acc_ref, *,
                 epsilon, two_lambda, bulk_rows, tile_rows, needs_mask,
                 approx_recip):
    i = pl.program_id(0)

    @pl.when(i == 0)
    def _():
        acc_ref[...] = jnp.zeros_like(acc_ref)

    # Lane-dense (tile_rows, 384) blocks; bf16 inputs are accepted and upcast here.
    pred = pred_ref[...].astype(jnp.float32)
    tgt = tgt_ref[...].astype(jnp.float32)
    var = var_ref[...].astype(jnp.float32)

    clamped = jnp.maximum(var, epsilon)
    inv = pl.reciprocal(clamped, approx=approx_recip)   # EUP slot when approx
    diff = tgt - pred
    mse = diff * diff * inv                 # un-weighted; weight applied post-reduce
    rest = jnp.log(clamped) + two_lambda * var

    if needs_mask:
        # Only the last grid step has a partial block; the iota/compare/selects
        # are cheap relative to the 36 B/elem HBM cost of this kernel.
        limit = bulk_rows - i * tile_rows
        row_ids = jax.lax.broadcasted_iota(jnp.int32, (tile_rows, _LANES), 0)
        valid = row_ids < limit
        zero = jnp.zeros_like(mse)
        mse = jnp.where(valid, mse, zero)
        rest = jnp.where(valid, rest, zero)

    # Sublane-group reduction: (tile_rows, 384) -> (8, 384) with plain vreg adds,
    # so the accumulator read-modify-write touches only 3 vregs per step.
    groups = tile_rows // 8
    mse_g = jnp.sum(mse.reshape(groups, 8, _LANES), axis=0)
    rest_g = jnp.sum(rest.reshape(groups, 8, _LANES), axis=0)

    # Weights are constant along the sublane-group axis (384 % 6 == 0), so they
    # can be applied once per 128 elements here instead of per element above.
    acc_ref[...] += mse_g * w_ref[...] + rest_g

    @pl.when(i == pl.num_programs(0) - 1)
    def _():
        # Single cross-lane reduction, once at the very end.
        out_ref[...] = jnp.broadcast_to(jnp.sum(acc_ref[...]), out_ref.shape)


def weighted_mse(predictions, target, variance, *, epsilon=EPSILON,
                 lambda_reg=LAMBDA_REG, max_tile_rows=1024,
                 approx_reciprocal=True):
    """Forward pass of WeightedMSE for (N, 6) predictions/target/variance."""
    N, C = predictions.shape
    assert C == _N_PARAMS, "expected 6 track parameters"
    total = N * C
    two_lambda = 2.0 * float(lambda_reg)
    weights = jnp.asarray(_WEIGHTS)

    # Bulk = largest prefix whose element count is a multiple of 384, so the
    # lane-dense view is a pure reshape (no pad).  Tail (<64 rows) is a tiny
    # jnp epilogue.
    n_bulk = (N // _ROWS_PER_LANE_ROW) * _ROWS_PER_LANE_ROW
    bulk_rows = (n_bulk * _N_PARAMS) // _LANES
    if bulk_rows < 8:                 # tiny input: not worth a kernel launch
        n_bulk, bulk_rows = 0, 0

    loss_sum = jnp.float32(0.0)

    if bulk_rows > 0:
        def lane_dense(x):
            xb = x if n_bulk == N else x[:n_bulk]
            # TODO(synk): when N % 64 != 0 this prefix slice may materialize a
            # copy; the fully copy-free path is N % 64 == 0 (tail -> epilogue).
            return xb.reshape(bulk_rows, _LANES)

        p2 = lane_dense(predictions)
        t2 = lane_dense(target)
        v2 = lane_dense(variance)

        target_steps = 4      # keep >= ~4 grid steps so DMA/compute overlap
        tile_rows = max(8, min(int(max_tile_rows),
                               _round_up(-(-bulk_rows // target_steps), 8)))
        inner_steps = -(-bulk_rows // tile_rows)
        needs_mask = (bulk_rows % tile_rows) != 0

        # Resident (8, 384) weight block; constant index_map => fetched once.
        w8 = jnp.asarray(np.broadcast_to(
            np.tile(_WEIGHTS, _LANES // _N_PARAMS)[None, :], (8, _LANES)).copy())

        kernel = functools.partial(
            _wmse_kernel, epsilon=float(epsilon), two_lambda=two_lambda,
            bulk_rows=bulk_rows, tile_rows=tile_rows, needs_mask=needs_mask,
            approx_recip=bool(approx_reciprocal))

        row_spec = pl.BlockSpec((tile_rows, _LANES), lambda i: (i, 0))

        out = pl.pallas_call(
            kernel,
            out_shape=jax.ShapeDtypeStruct((8, 128), jnp.float32),
            grid_spec=pltpu.PrefetchScalarGridSpec(
                num_scalar_prefetch=0,
                grid=(inner_steps,),
                in_specs=[pl.BlockSpec((8, _LANES), lambda i: (0, 0)),
                          row_spec, row_spec, row_spec],
                out_specs=pl.BlockSpec((8, 128), lambda i: (0, 0)),
                scratch_shapes=[pltpu.VMEM((8, _LANES), jnp.float32)],
            ),
            compiler_params=pltpu.CompilerParams(
                dimension_semantics=("arbitrary",),
                vmem_limit_bytes=32 * 1024 * 1024,
            ),
        )(w8, p2, t2, v2)
        loss_sum = loss_sum + out[0, 0]

    if n_bulk < N:
        # <64-row tail (or tiny inputs): negligible HBM traffic, plain jnp.
        pt = predictions[n_bulk:].astype(jnp.float32)
        tt = target[n_bulk:].astype(jnp.float32)
        vt = variance[n_bulk:].astype(jnp.float32)
        clamped = jnp.maximum(vt, epsilon)
        loss_sum = loss_sum + jnp.sum(
            (tt - pt) ** 2 * weights[None, :] / clamped
            + jnp.log(clamped) + two_lambda * vt)

    # loss = mean(w*d^2/(2*clamped) + 0.5*log(clamped)) + lambda*mean(var)
    #      = 0.5/total * sum(w*d^2/clamped + log(clamped) + 2*lambda*var)
    return 0.5 * loss_sum / float(total)


def _reference(predictions, target, variance,
               epsilon=EPSILON, lambda_reg=LAMBDA_REG):
    weights = jnp.asarray(_WEIGHTS)
    clamped = jnp.maximum(variance, epsilon)
    mse_term = (target - predictions) ** 2 * weights[None, :]
    loss = jnp.mean(mse_term / (2.0 * clamped) + 0.5 * jnp.log(clamped))
    return loss + lambda_reg * jnp.mean(variance)


if __name__ == "__main__":
    key = jax.random.PRNGKey(0)
    kp, kt, kv = jax.random.split(key, 3)

    # Small case: N not a multiple of 64 exercises the masked partial tile and
    # the jnp tail epilogue; one exact-zero variance exercises the eps clamp.
    N = 1000
    predictions = jax.random.normal(kp, (N, 6), dtype=jnp.float32)
    target = jax.random.normal(kt, (N, 6), dtype=jnp.float32)
    variance = jax.random.uniform(kv, (N, 6), dtype=jnp.float32,
                                  minval=0.0, maxval=0.5)
    variance = variance.at[0, 0].set(0.0)

    ref = _reference(predictions, target, variance)

    out = jax.block_until_ready(weighted_mse(predictions, target, variance))
    assert jnp.allclose(out, ref, rtol=5e-3, atol=1e-5), (out, ref)   # approx recip

    out_exact = jax.block_until_ready(
        weighted_mse(predictions, target, variance, approx_reciprocal=False))
    assert jnp.allclose(out_exact, ref, rtol=1e-4, atol=1e-6), (out_exact, ref)

    # Large case: N % 64 == 0 -> fully copy-free reshape path, 1024-row tiles,
    # 8 inner grid steps, no masking.
    N2 = 524288
    kp2, kt2, kv2 = jax.random.split(jax.random.PRNGKey(1), 3)
    p2 = jax.random.normal(kp2, (N2, 6), dtype=jnp.float32)
    t2 = jax.random.normal(kt2, (N2, 6), dtype=jnp.float32)
    v2 = jax.random.uniform(kv2, (N2, 6), dtype=jnp.float32,
                            minval=0.05, maxval=0.5)
    out2 = jax.block_until_ready(weighted_mse(p2, t2, v2))
    ref2 = _reference(p2, t2, v2)
    assert jnp.allclose(out2, ref2, rtol=5e-3, atol=1e-5), (out2, ref2)

    print("KERNEL_OK")
</pallas_src>

<mosaic_0001>
module attributes {stable_mosaic.version = 11 : i64} {
  func.func @_wmse_kernel(%arg0: i32, %arg1: memref<8x384xf32, #tpu.memory_space<vmem>>, %arg2: memref<8x384xf32, #tpu.memory_space<vmem>>, %arg3: memref<8x384xf32, #tpu.memory_space<vmem>>, %arg4: memref<8x384xf32, #tpu.memory_space<vmem>>, %arg5: memref<8x128xf32, #tpu.memory_space<vmem>>, %arg6: memref<8x384xf32, #tpu.memory_space<vmem>>) attributes {dimension_semantics = [#tpu.dimension_semantics<arbitrary>], iteration_bounds = array<i64: 2>, scalar_prefetch = 0 : i64, scratch_operands = 1 : i64, tpu.core_type = #tpu.core_type<tc>, window_params = [{pipeline_mode = #tpu.pipeline_mode<synchronous>, transform_indices = @transform_0, window_bounds = array<i64: 8, 384>}, {transform_indices = @transform_1, window_bounds = array<i64: 8, 384>}, {transform_indices = @transform_2, window_bounds = array<i64: 8, 384>}, {transform_indices = @transform_3, window_bounds = array<i64: 8, 384>}, {pipeline_mode = #tpu.pipeline_mode<synchronous>, transform_indices = @transform_4, window_bounds = array<i64: 8, 128>}]} {
    %c0_i32 = arith.constant 0 : i32
    %0 = arith.cmpi eq, %arg0, %c0_i32 : i32
    %1 = arith.extui %0 : i1 to i32
    %c0_i32_0 = arith.constant 0 : i32
    %2 = arith.cmpi ne, %1, %c0_i32_0 : i32
    scf.if %2 {
      %cst_17 = arith.constant 0.000000e+00 : f32
      %37 = vector.broadcast %cst_17 : f32 to vector<8x384xf32>
      %c0_18 = arith.constant 0 : index
      %c0_19 = arith.constant 0 : index
      %38 = vector.load %arg6[%c0_18, %c0_19] : memref<8x384xf32, #tpu.memory_space<vmem>>, vector<8x384xf32>
      tpu.vector_store %arg6[%c0_18, %c0_19], %37 {strides = array<i32>} : memref<8x384xf32, #tpu.memory_space<vmem>>, vector<8x384xf32>,
    } else {
    }
    %c0 = arith.constant 0 : index
    %c0_1 = arith.constant 0 : index
    %3 = vector.load %arg2[%c0, %c0_1] : memref<8x384xf32, #tpu.memory_space<vmem>>, vector<8x384xf32>
    %c0_2 = arith.constant 0 : index
    %c0_3 = arith.constant 0 : index
    %4 = vector.load %arg3[%c0_2, %c0_3] : memref<8x384xf32, #tpu.memory_space<vmem>>, vector<8x384xf32>
    %c0_4 = arith.constant 0 : index
    %c0_5 = arith.constant 0 : index
    %5 = vector.load %arg4[%c0_4, %c0_5] : memref<8x384xf32, #tpu.memory_space<vmem>>, vector<8x384xf32>
    %cst = arith.constant 9.99999997E-7 : f32
    %6 = vector.broadcast %cst : f32 to vector<8x384xf32>
    %7 = arith.maximumf %5, %6 : vector<8x384xf32>
    %8 = tpu.reciprocal %7 {approx = true} : vector<8x384xf32> -> vector<8x384xf32>
    %9 = arith.subf %4, %3 : vector<8x384xf32>
    %10 = arith.mulf %9, %9 : vector<8x384xf32>
    %11 = arith.mulf %10, %8 : vector<8x384xf32>
    %12 = math.log %7 : vector<8x384xf32>
    %cst_6 = arith.constant 2.000000e-03 : f32
    %13 = vector.broadcast %cst_6 : f32 to vector<8x384xf32>
    %14 = arith.mulf %13, %5 : vector<8x384xf32>
    %15 = arith.addf %12, %14 : vector<8x384xf32>
    %c8_i32 = arith.constant 8 : i32
    %16 = arith.muli %arg0, %c8_i32 : i32
    %c15_i32 = arith.constant 15 : i32
    %17 = arith.subi %c15_i32, %16 : i32
    %18 = tpu.iota {dimensions = array<i32: 0>} : vector<8x384xi32>
    %19 = vector.broadcast %17 : i32 to vector<8x384xi32>
    %20 = arith.cmpi slt, %18, %19 : vector<8x384xi32>
    %cst_7 = arith.constant 0.000000e+00 : f32
    %21 = vector.broadcast %cst_7 : f32 to vector<8x384xf32>
    %22 = arith.select %20, %11, %21 : vector<8x384xi1>, vector<8x384xf32>
    %23 = arith.select %20, %15, %21 : vector<8x384xi1>, vector<8x384xf32>
    %24 = vector.shape_cast %22 : vector<8x384xf32> to vector<1x8x384xf32>
    %cst_8 = arith.constant dense<0.000000e+00> : vector<8x384xf32>
    %25 = vector.multi_reduction <add>, %24, %cst_8 [0] : vector<1x8x384xf32> to vector<8x384xf32>
    %26 = vector.shape_cast %23 : vector<8x384xf32> to vector<1x8x384xf32>
    %cst_9 = arith.constant dense<0.000000e+00> : vector<8x384xf32>
    %27 = vector.multi_reduction <add>, %26, %cst_9 [0] : vector<1x8x384xf32> to vector<8x384xf32>
    %c0_10 = arith.constant 0 : index
    %c0_11 = arith.constant 0 : index
    %28 = vector.load %arg6[%c0_10, %c0_11] : memref<8x384xf32, #tpu.memory_space<vmem>>, vector<8x384xf32>
    %c0_12 = arith.constant 0 : index
    %c0_13 = arith.constant 0 : index
    %29 = vector.load %arg1[%c0_12, %c0_13] : memref<8x384xf32, #tpu.memory_space<vmem>>, vector<8x384xf32>
    %30 = arith.mulf %25, %29 : vector<8x384xf32>
    %31 = arith.addf %30, %27 : vector<8x384xf32>
    %32 = arith.addf %28, %31 : vector<8x384xf32>
    %c0_14 = arith.constant 0 : index
    %c0_15 = arith.constant 0 : index
    %33 = vector.load %arg6[%c0_14, %c0_15] : memref<8x384xf32, #tpu.memory_space<vmem>>, vector<8x384xf32>
    tpu.vector_store %arg6[%c0_14, %c0_15], %32 {strides = array<i32>} : memref<8x384xf32, #tpu.memory_space<vmem>>, vector<8x384xf32>,
    %c1_i32 = arith.constant 1 : i32
    %34 = arith.cmpi eq, %arg0, %c1_i32 : i32
    %35 = arith.extui %34 : i1 to i32
    %c0_i32_16 = arith.constant 0 : i32
    %36 = arith.cmpi ne, %35, %c0_i32_16 : i32
    scf.if %36 {
      %c0_17 = arith.constant 0 : index
      %c0_18 = arith.constant 0 : index
      %37 = vector.load %arg6[%c0_17, %c0_18] : memref<8x384xf32, #tpu.memory_space<vmem>>, vector<8x384xf32>
      %38 = vector.shape_cast %37 : vector<8x384xf32> to vector<1x8x384xf32>
      %cst_19 = arith.constant dense<0.000000e+00> : vector<1xf32>
      %39 = vector.multi_reduction <add>, %38, %cst_19 [1, 2] : vector<1x8x384xf32> to vector<1xf32>
      %40 = vector.shape_cast %39 : vector<1xf32> to vector<1x1x1xf32>
      %41 = vector.extract %40[0, 0, 0] : f32 from vector<1x1x1xf32>
      %42 = vector.broadcast %41 : f32 to vector<8x128xf32>
      %c0_20 = arith.constant 0 : index
      %c0_21 = arith.constant 0 : index
      %43 = vector.load %arg5[%c0_20, %c0_21] : memref<8x128xf32, #tpu.memory_space<vmem>>, vector<8x128xf32>
      tpu.vector_store %arg5[%c0_20, %c0_21], %42 {strides = array<i32>} : memref<8x128xf32, #tpu.memory_space<vmem>>, vector<8x128xf32>,
    } else {
    }
    return
  }
  func.func @transform_0(%arg0: i32) -> (i32, i32) {
    %c0_i32 = arith.constant 0 : i32
    %c0_i32_0 = arith.constant 0 : i32
    %c0_i32_1 = arith.constant 0 : i32
    return %c0_i32, %c0_i32_0 : i32, i32
  }
  func.func @transform_1(%arg0: i32) -> (i32, i32) {
    %c0_i32 = arith.constant 0 : i32
    %c0_i32_0 = arith.constant 0 : i32
    return %arg0, %c0_i32 : i32, i32
  }
  func.func @transform_2(%arg0: i32) -> (i32, i32) {
    %c0_i32 = arith.constant 0 : i32
    %c0_i32_0 = arith.constant 0 : i32
    return %arg0, %c0_i32 : i32, i32
  }
  func.func @transform_3(%arg0: i32) -> (i32, i32) {
    %c0_i32 = arith.constant 0 : i32
    %c0_i32_0 = arith.constant 0 : i32
    return %arg0, %c0_i32 : i32, i32
  }
  func.func @transform_4(%arg0: i32) -> (i32, i32) {
    %c0_i32 = arith.constant 0 : i32
    %c0_i32_0 = arith.constant 0 : i32
    %c0_i32_1 = arith.constant 0 : i32
    return %c0_i32, %c0_i32_0 : i32, i32
  }
}

</mosaic_0001>

<bundles_post_ra>
// kernel: tpu_custom_call.1
= control target key start
LH: loop header
LB: loop body
LE: loop exit
PB: predicated region body
PF: predicated region fallthrough
CT: control target
= control target key end

     0   :  { %9 = vsyncpa [#allocation4], 0  ;;  %s1019_s0 = inlined_call_operand.hbm [shape: f32[8,384], index: 0, kind: input, shape index: {}]   ;;  %s1020_s1 = inlined_call_operand.hbm [shape: f32[15,384], index: 1, kind: input, shape index: {}]   ;;  %s1021_s2 = inlined_call_operand.hbm [shape: f32[15,384], index: 2, kind: input, shape index: {}]   ;;  %s1022_s3 = inlined_call_operand.hbm [shape: f32[15,384], index: 3, kind: input, shape index: {}]   ;;  %s1023_s4 = inlined_call_operand.hbm [shape: f32[8,128], index: 4, kind: output, shape index: {}]  }
   0x1   :  { %10 = vsyncpa [#allocation7], 0 }
   0x2   :  { %12 = vsyncpa [#allocation7 + $0x1], 0 }
   0x3   :  { %13 = vsyncpa [#allocation10], 0 }
   0x4   :  { %15 = vsyncpa [#allocation10 + $0x1], 0 }
   0x5   :  { %16 = vsyncpa [#allocation5], 0  ;;  %s838_s15 = smov 0   ;;  %s840_s16 = smov 0  }
   0x6   :  { %s842_s17 = smov 0   ;;  %s844_s18 = smov 0  }
   0x7 LB: > { %s859_s19 = sadd.s32 1, %s808_s18   ;;  %s50_s20 = sadd.s32 1, %s804_s17  ;;  %s808_s18 = sphi %s844_s18, %s1032_s18   ;;  %s804_s17 = sphi %s842_s17, %s1031_s17   ;;  %s800_s16 = sphi %s840_s16, %s1030_s16   ;;  %s796_s15 = sphi %s838_s15, %s1029_s15  }
   0x8   : > { %s47_s21 = ssub.s32 %s808_s18, %s859_s19  ;;  %p57_p0 = scmp.ne.s32.totalorder %s804_s17, %s800_s16 }
   0x9   : > { %p48_p1 = scmp.eq.s32.totalorder %s47_s21, 0  ;;  %p58_p2 = scmp.eq.s32.totalorder %s808_s18, 0 }
   0xa   : > { %p563_p3 = scmp.lt.s32.totalorder %s808_s18, 2  ;;  %s172_s23 = sand.u32 1, %s808_s18  }
   0xb   : > { %s869_s22 = scalar_select %p48_p1, %s804_s17, %s50_s20  }
   0xc   : > { %p59_p4 = por %p58_p2, %p57_p0  ;;  %s174_s24 = sand.u32 1, %s804_s17  }
   0xd   : > { %s875_s25 = smul.u32 24, %s174_s24  ;;  %s889_s8 = scalar_lea.sflag [#allocation7], %s172_s23 }
   0xe   : > { %p877_p5 = pnand %p563_p3, %p59_p4  ;;  %s882_s27 = smul.u32 24, %s808_s18 }
   0xf   : > { %s176_s5 = scalar_lea.vmem [#allocation6], %s875_s25  ;;  %s621_s13 = scalar_lea.hbm %s1020_s1, 48 }
  0x10   : > { %s181_s30 = scalar_lea.hbm %s1020_s1, %s882_s27  ;;  %s185_s6 = sshll.u32 %s176_s5, 4  ;;  %s186_s6 = int_to_ptr.vmem [resolvable:$true] %s185_s6 }
  0x11   : > { %s183_s7 = sshll.u32 %s181_s30, 4  ;;  %p618_p7 = pneg %p877_p5  ;;  %s184_s7 = int_to_ptr.hbm [resolvable:$true] %s183_s7 }
  0x12   : > { %s614_s9 = sshra.s32 %s184_s7, 4  ;;  %s615_s9 = int_to_ptr.hbm [resolvable:$true] %s614_s9 }
  0x13   : > { %s616_s10 = scalar_lea.hbm %s615_s9, 24  ;;  %p622_p10 = scmp.lt.s32.totalorder %s615_s9, %s1020_s1 }
  0x14   : > { %p617_p6 = scmp.ne.s32.totalorder %s615_s9, %s616_s10  ;;  %p623_p11 = scmp.lt.s32.totalorder %s621_s13, %s616_s10 }
  0x16   : > { %p619_p8 = pnand %p618_p7, %p617_p6  ;;  %p624_p12 = por %p623_p11, %p622_p10 }
  0x18   : > { %p620_p9 = pneg %p619_p8 }
  0x1a   : > { %p625_p13 = pnand %p624_p12, %p620_p9 }
  0x1c   : > { %628 = shalt.err (!%p625_p13)
}
  0x1d   : > { %555 = dma.hbm_to_vmem [thread:$0]  (!%p877_p5), %s184_s7, 384, %s186_s6, %s889_s8  }
  0x1e   : > { %s906_s21 = sadd.s32 4294967295, %s808_s18   ;;  %p63_p0 = scmp.ne.s32.totalorder %s800_s16, %s796_s15 }
  0x1f   : > { %p64_p1 = scmp.eq.s32.totalorder %s906_s21, 0  ;;  %p510_p2 = scmp.ge.s32.totalorder %s808_s18, 1 }
  0x20   : > { %p147_p3 = scmp.lt.s32.totalorder %s808_s18, 3  ;;  %p511_p4 = scmp.ne.s32.totalorder %s906_s21, 0 }
  0x21   : > { %p916_p6 = por %p64_p1, %p63_p0  ;;  %s159_s30 = sshll.u32 %s1019_s0, 4  ;;  %s160_s30 = int_to_ptr.hbm [resolvable:$true] %s159_s30 }
  0x22   : > { %p923_p8 = pnand %p510_p2, %p147_p3  ;;  %s810_s15 = smov [#allocation3]  }
  0x23   : > { %s161_s18 = sshll.u32 %s810_s15, 4  ;;  %s201_s9 = scalar_lea.hbm %s1021_s2, %s882_s27  ;;  %s162_s18 = int_to_ptr.vmem [resolvable:$true] %s161_s18 }
  0x24   : > { %p548_p9 = pneg %p923_p8  ;;  %s203_s10 = sshll.u32 %s201_s9, 4  ;;  %s204_s10 = int_to_ptr.hbm [resolvable:$true] %s203_s10 }
  0x25   : > { %s196_s11 = scalar_lea.vmem [#allocation8], %s875_s25  ;;  %s674_s13 = sshra.s32 %s204_s10, 4  ;;  %s675_s13 = int_to_ptr.hbm [resolvable:$true] %s674_s13 }
  0x26   : > { %p549_p10 = pnand %p548_p9, %p64_p1  ;;  %s205_s12 = sshll.u32 %s196_s11, 4  ;;  %s206_s12 = int_to_ptr.vmem [resolvable:$true] %s205_s12 }
  0x27   : > { %s676_s14 = scalar_lea.hbm %s675_s13, 24  ;;  %s681_s29 = scalar_lea.hbm %s1021_s2, 48 }
  0x28   : > { %551 = dma.hbm_to_vmem [thread:$0]  (!%p549_p10), %s160_s30, 384, %s162_s18, [#allocation4]  }
  0x29   : > { %p677_p11 = scmp.ne.s32.totalorder %s675_s13, %s676_s14  ;;  %p682_p0 = scmp.lt.s32.totalorder %s675_s13, %s1021_s2 }
  0x2a   : > { %p683_p2 = scmp.lt.s32.totalorder %s681_s29, %s676_s14 }
  0x2b   : > { %p679_p12 = pnand %p677_p11, %p618_p7 }
  0x2c   : > { %p684_p3 = por %p683_p2, %p682_p0 }
  0x2d   : > { %p680_p13 = pneg %p679_p12 }
  0x2f   : > { %p685_p9 = pnand %p684_p3, %p680_p13 }
  0x31   : > { %688 = shalt.err (!%p685_p9)
}
  0x32   : > { %558 = dma.hbm_to_vmem [thread:$0]  (!%p877_p5), %s204_s10, 384, %s206_s12, %s889_s8  }
  0x33   : > { %s221_s7 = scalar_lea.hbm %s1022_s3, %s882_s27  ;;  %s216_s9 = scalar_lea.vmem [#allocation9], %s875_s25 }
  0x34   : > { %s225_s11 = sshll.u32 %s216_s9, 4  ;;  %s223_s20 = sshll.u32 %s221_s7, 4  ;;  %s226_s11 = int_to_ptr.vmem [resolvable:$true] %s225_s11  ;;  %s224_s20 = int_to_ptr.hbm [resolvable:$true] %s223_s20 }
  0x35   : > { %s213_s13 = scalar_lea.sflag [#allocation10], %s174_s24  ;;  %s704_s14 = sshra.s32 %s224_s20, 4  ;;  %s705_s14 = int_to_ptr.hbm [resolvable:$true] %s704_s14 }
  0x36   : > { %s706_s28 = scalar_lea.hbm %s705_s14, 24  ;;  %s711_s12 = scalar_lea.hbm %s1022_s3, 48 }
  0x37   : > { %p707_p10 = scmp.ne.s32.totalorder %s705_s14, %s706_s28  ;;  %p712_p13 = scmp.lt.s32.totalorder %s705_s14, %s1022_s3 }
  0x38   : > { %p713_p0 = scmp.lt.s32.totalorder %s711_s12, %s706_s28 }
  0x39   : > { %p709_p11 = pnand %p707_p10, %p618_p7 }
  0x3a   : > { %p714_p2 = por %p713_p0, %p712_p13 }
  0x3b   : > { %p710_p12 = pneg %p709_p11 }
  0x3d   : > { %p715_p3 = pnand %p714_p2, %p710_p12 }
  0x3f   : > { %718 = shalt.err (!%p715_p3)
}
  0x40   : > { %561 = dma.hbm_to_vmem [thread:$0]  (!%p877_p5), %s224_s20, 384, %s226_s11, %s213_s13  }
  0x41   : > { %234 = sbr.rel (%p923_p8) target bundleno = 308 (0x134), region = 36 }
  0x46   : > { %779 = dma.done.wait (%p64_p1), [#allocation4], 384  }
  0x47   : > { %781 = vsyncadd (%p64_p1), [#allocation4], 4294966912  ;;  %s241_s24 = sand.u32 1, %s906_s21   ;;  %s243_s29 = sand.u32 1, %s800_s16  }
  0x48   : > { %s531_s15 = smul.u32 24, %s243_s29  ;;  %s242_s6 = scalar_lea.sflag [#allocation7], %s241_s24 }
  0x4a   : > { %s245_s30 = scalar_lea.vmem [#allocation6], %s531_s15 }
  0x4b   : > { %783 = dma.done.wait (%p916_p6), %s242_s6, 768  }
  0x4c   : > { %785 = vsyncadd (%p916_p6), %s242_s6, 4294966528  ;;  %s255_s26 = scalar_lea.vmem [#allocation8], %s531_s15  ;;  %s262_s5 = scalar_lea.sflag [#allocation10], %s243_s29 }
  0x4d   : > { %s265_s18 = scalar_lea.vmem [#allocation9], %s531_s15 }
  0x4e   : > { %787 = dma.done.wait (%p916_p6), %s262_s5, 384  }
  0x4f   : > { %789 = vsyncadd (%p916_p6), %s262_s5, 4294966912  ;;  %299 = sbr.rel (%p511_p4) target bundleno = 88 (0x58), region = 56 }
  0x54   : > { %v811_v0 = vmov 0.0  }
  0x55   : > { %300 = vst [vmem:[#allocation2 + $0x10] sm:$0xff] %v811_v0 }
  0x56   : > { %301 = vst [vmem:[#allocation2] sm:$0xff] %v811_v0 }
  0x57   : > { %302 = vst [vmem:[#allocation2 + $0x8] sm:$0xff] %v811_v0 }
  0x58 PF: > { %v303_v1 = vld [vmem:[%s245_s30] sm:$0xff]  ;;  %v306_v2 = vld [vmem:[%s255_s26] sm:$0xff]  ;;  %s519_s7 = sshll.u32 %s906_s21, 3  ;;  %v341_v5 = vlaneseq  ;;  %v304_v7 = vld [vmem:[%s245_s30 + $0x8] sm:$0xff]  ;;  %p520_p5 = scmp.ne.s32.totalorder %s906_s21, 1 }
  0x59   : > { %v309_v3 = vld [vmem:[%s265_s18] sm:$0xff]  ;;  %v318_v6 = vsub.f32 %v306_v2, %v303_v1  ;;  %v307_v8 = vld [vmem:[%s255_s26 + $0x8] sm:$0xff]  ;;  %s340_s23 = ssub.s32 15, %s519_s7  ;;  %v310_v9 = vld [vmem:[%s265_s18 + $0x8] sm:$0xff] }
  0x5a   : > { %v312_v4 = vmax.f32 %v309_v3, 1e-06  ;;  %v313_v10 = vmax.f32 %v310_v9, 1e-06  ;;  %v305_v11 = vld [vmem:[%s245_s30 + $0x10] sm:$0xff]  ;;  %v308_v12 = vld [vmem:[%s255_s26 + $0x10] sm:$0xff]  ;;  %v319_v14 = vsub.f32 %v307_v8, %v304_v7  ;;  %v343_v17 = vstv %s340_s23 }
  0x5b   : > { %v342_v13 = vshrl.u32 %v341_v5, 7  ;;  %v311_v15 = vld [vmem:[%s265_s18 + $0x10] sm:$0xff]  ;;  %v321_v16 = vmul.f32 %v318_v6, %v318_v6  ;;  %v320_v19 = vsub.f32 %v308_v12, %v305_v11  ;;  %v333_v21 = vmul.f32 0.002, %v309_v3  ;;  %v362_v45 = vld [vmem:[#allocation3 + $0x10] sm:$0xff] }
  0x5c   : > { %602 = vrcp.f32 %v312_v4  ;;  %v314_v18 = vmax.f32 %v311_v15, 1e-06  ;;  %v322_v23 = vmul.f32 %v319_v14, %v319_v14  ;;  %v360_v26 = vld [vmem:[#allocation3] sm:$0xff]  ;;  %v334_v31 = vmul.f32 0.002, %v310_v9  ;;  %v361_v36 = vld [vmem:[#allocation3 + $0x8] sm:$0xff] }
  0x5d   : > { %604 = vlog2.f32 %v312_v4  ;;  %vm985_vm0 = vcmp.lt.s32.totalorder %v342_v13, %v343_v17  ;;  %v323_v28 = vmul.f32 %v320_v19, %v320_v19  ;;  %v335_v39 = vmul.f32 0.002, %v311_v15  ;;  %v357_v42 = vld [vmem:[#allocation2 + $0x10] sm:$0xff]  ;;  %v358_v53 = vld [vmem:[#allocation2] sm:$0xff] }
  0x5e   : > { %606 = vrcp.f32 %v313_v10  ;;  %v359_v58 = vld [vmem:[#allocation2 + $0x8] sm:$0xff] }
  0x5f   : > { %608 = vlog2.f32 %v313_v10 }
  0x60   : > { %610 = vrcp.f32 %v314_v18 }
  0x61   : > { %612 = vlog2.f32 %v314_v18 }
  0x62   : > { %v603_v20 = vpop.eup %602 }
  0x63   : > { %v605_v24 = vpop.eup %604  ;;  %v324_v25 = vmul.f32 %v603_v20, %v321_v16 }
  0x64   : > { %v328_v27 = vmul.f32 0.6931472, %v605_v24  ;;  %v607_v29 = vpop.eup %606 }
  0x65   : > { %v345_v30 = vsel %vm985_vm0, %v324_v25, 0.0  ;;  %v609_v32 = vpop.eup %608  ;;  %v325_v35 = vmul.f32 %v607_v29, %v322_v23 }
  0x66   : > { %v336_v33 = vadd.f32 %v333_v21, %v328_v27  ;;  %v363_v34 = vmul.f32 %v360_v26, %v345_v30  ;;  %v611_v37 = vpop.eup %610  ;;  %v330_v38 = vmul.f32 0.6931472, %v609_v32 }
  0x67   : > { %v613_v40 = vpop.eup %612  ;;  %v346_v43 = vsel %vm985_vm0, %v325_v35, 0.0  ;;  %v326_v44 = vmul.f32 %v611_v37, %v323_v28 }
  0x68   : > { %v348_v41 = vsel %vm985_vm0, %v336_v33, 0.0  ;;  %v337_v47 = vadd.f32 %v334_v31, %v330_v38  ;;  %v364_v48 = vmul.f32 %v361_v36, %v346_v43  ;;  %v332_v49 = vmul.f32 0.6931472, %v613_v40 }
  0x69   : > { %v366_v46 = vadd.f32 %v363_v34, %v348_v41  ;;  %v347_v50 = vsel %vm985_vm0, %v326_v44, 0.0 }
  0x6a   : > { %v349_v52 = vsel %vm985_vm0, %v337_v47, 0.0  ;;  %v338_v54 = vadd.f32 %v335_v39, %v332_v49  ;;  %v365_v55 = vmul.f32 %v362_v45, %v347_v50 }
  0x6b   : > { %v369_v51 = vadd.f32 %v366_v46, %v357_v42  ;;  %v367_v56 = vadd.f32 %v364_v48, %v349_v52 }
  0x6c   : > { %v350_v57 = vsel %vm985_vm0, %v338_v54, 0.0 }
  0x6d   : > { %372 = vst [vmem:[#allocation2 + $0x10] sm:$0xff] %v369_v51  ;;  %v370_v59 = vadd.f32 %v367_v56, %v358_v53  ;;  %v368_v60 = vadd.f32 %v365_v55, %v350_v57  ;;  %378 = sbr.rel (%p520_p5) target bundleno = 303 (0x12f), region = 60 }
  0x6f   : > { %373 = vst [vmem:[#allocation2] sm:$0xff] %v370_v59  ;;  %v371_v61 = vadd.f32 %v368_v60, %v359_v58 }
  0x71   : > { %374 = vst [vmem:[#allocation2 + $0x8] sm:$0xff] %v371_v61 }
  0x74   : > { %v379_v62 = vld [vmem:[#allocation2 + $0x10] sm:$0xff] }
  0x76   : > { %v380_v63 = vld [vmem:[#allocation2] sm:$0xff] }
  0x77   : > { %v382_v1 = vadd.f32 %v380_v63, %v379_v62 }
  0x78   : > { %v381_v0 = vld [vmem:[#allocation2 + $0x8] sm:$0xff] }
  0x79   : > { %v383_v2 = vadd.f32 %v382_v1, %v381_v0 }
  0x7b   : > { %384 = vadd.xlane.f32.xlu0 %v383_v2 }
  0xee   : > { %v385_v3 = vpop.xlane.xlu0 %384 }
  0xef   : > { %v386_v4 = vrot.slane %v385_v3, 4 }
  0xf1   : > { %v387_v5 = vadd.f32 %v386_v4, %v385_v3 }
  0xf3   : > { %v388_v6 = vrot.slane %v387_v5, 2 }
  0xf5   : > { %v389_v7 = vadd.f32 %v388_v6, %v387_v5 }
  0xf7   : > { %v390_v8 = vrot.slane %v389_v7, 1 }
  0xf9   : > { %v391_v9 = vadd.f32 %v390_v8, %v389_v7 }
  0xfb   : > { %532 = vpush %v391_v9 }
 0x12c   : > { %s533_s9 = spop %532 }
 0x12d   : > { %v393_v10 = vstv %s533_s9 }
 0x12e   : > { %394 = vst [vmem:[#allocation11] sm:$0xff] %v393_v10 }
 0x12f PF: > { %p565_p7 = scmp.eq.s32.totalorder %s906_s21, 1  ;;  %s812_s11 = smov [#allocation11]  }
 0x130   : > { %s401_s20 = sshll.u32 %s812_s11, 4  ;;  %s403_s28 = sshll.u32 %s1023_s4, 4  ;;  %s402_s20 = int_to_ptr.vmem [resolvable:$true] %s401_s20  ;;  %s404_s28 = int_to_ptr.hbm [resolvable:$true] %s403_s28 }
 0x131   : > { %545 = dma.vmem_to_hbm [thread:$0]  (%p565_p7), %s402_s20, 128, %s404_s28, [#allocation5]  }
 0x132   : > { %791 = dma.done.wait (%p565_p7), [#allocation5], 128  }
 0x133   : > { %793 = vsyncadd (%p565_p7), [#allocation5], 4294967168 }
 0x134 PF: > { %p19_p1 = scmp.ge.s32.totalorder %s859_s19, 4   ;;  %s1029_s15 = smov %s800_s16 }
 0x135   : > { %s1030_s16 = smov %s804_s17  ;;  %s1031_s17 = smov %s869_s22 }
 0x136   : > { %s1032_s18 = smov %s859_s19  ;;  %21 = sbr.rel (!%p19_p1) target bundleno = 7 (0x7), region = 110 }
 0x13b   :  { %417 = vsyncpa [#allocation4], 1 }
 0x13c   :  { %419 = vsyncpa [#allocation4 + $0x1], 1 }
 0x13d   :  { %420 = vsyncpa [#allocation7], 1 }
 0x13e   :  { %422 = vsyncpa [#allocation7 + $0x1], 1 }
 0x13f   :  { %423 = vsyncpa [#allocation10], 1 }
 0x140   :  { %425 = vsyncpa [#allocation10 + $0x1], 1 }
 0x141   :  { %426 = vsyncpa [#allocation5], 1 }
 0x142   :  { %428 = vsyncpa [#allocation5 + $0x1], 1 }

</bundles_post_ra>
